<compile_context>
chip_gen: v7x
topology: tpu7x:2x2x1
jax: 0.10.0
libtpu: 0.0.40
codegen_flags: <defaults>
</compile_context>

<pallas_src>
import jax
import jax.numpy as jnp
from jax.experimental import pallas as pl
from jax.experimental.pallas import tpu as pltpu

LANE = 128
SUBLANE_BF16 = 16   # bf16 packs 16 sublanes per vreg


def _round_up(v, m):
    return (v + m - 1) // m * m


# ---------------------------------------------------------------------------
# Fused Pallas kernel: all ARMA layers + fc head, single invocation (no grid)
# ---------------------------------------------------------------------------

def _make_fused_kernel(num_chain, K, HP):
    """Kernel signature: (a, x, [w_l, b_l]*num_chain, fc_w, fc_b, o)."""

    def kernel(*refs):
        a_ref = refs[0]
        x_ref = refs[1]
        layer_refs = refs[2:2 + 2 * num_chain]
        fcw_ref = refs[2 + 2 * num_chain]
        fcb_ref = refs[3 + 2 * num_chain]
        o_ref = refs[4 + 2 * num_chain]

        a = a_ref[...]                       # [Np, Np]      bf16
        h = x_ref[...]                       # [Np, F0p]     bf16

        for l in range(num_chain):
            w = layer_refs[2 * l][...]       # [2*Fp, K*HP]  bf16 ([Wi; Wr], 1/K folded for l>0)
            b = layer_refs[2 * l + 1][...]   # [1,  K*HP]    f32

            # Hoisted propagation computed once per layer, shared by all K
            # stacks ((A @ h) @ Wi_k == A @ (h @ Wi_k)).
            p = jnp.dot(a, h, preferred_element_type=jnp.float32)
            p = p.astype(jnp.bfloat16)

            # One wide MXU matmul covers prop + root terms of all K stacks:
            # z = [p | h] has a 2*Fp-deep (==256) contraction against [Wi; Wr].
            z = jnp.concatenate([p, h], axis=-1)            # [Np, 2*Fp] bf16
            y = jnp.dot(z, w, preferred_element_type=jnp.float32)
            y = jnp.maximum(y + b, 0.0)                      # [Np, K*HP] f32

            # Sum over the K stacks (lane-aligned 128-wide slices); the 1/K
            # mean scale is pre-folded into the next layer's W / fc_w.
            acc = y[:, 0:HP]
            for k in range(1, K):
                acc = acc + y[:, k * HP:(k + 1) * HP]
            h = acc.astype(jnp.bfloat16)                     # next layer input

        # Fused fc head; lane-dense (padded-to-128) output store.
        out = jnp.dot(h, fcw_ref[...], preferred_element_type=jnp.float32)
        o_ref[...] = (out + fcb_ref[...]).astype(o_ref.dtype)

    return kernel


# ---------------------------------------------------------------------------
# One-time host-side packing (params + graph are static)
# ---------------------------------------------------------------------------

def _pack_stacked_weights(w_init, w_root, d_in_p, HP, scale):
    """[K, d_in, H] x2 -> [2*d_in_p, K*HP] bf16; stack k occupies lanes
    [k*HP, k*HP+H); rows [0, d_in_p) are Wi (prop term), rows [d_in_p, 2*d_in_p)
    are Wr (root term). `scale` folds the previous layer's 1/K mean."""
    K, d_in, H = w_init.shape

    def pack(w):
        wp = jnp.zeros((K, d_in_p, HP), jnp.float32).at[:, :d_in, :H].set(w * scale)
        return wp.transpose(1, 0, 2).reshape(d_in_p, K * HP)

    return jnp.concatenate([pack(w_init), pack(w_root)], axis=0).astype(jnp.bfloat16)


def _pack_stack_bias(bias, HP):
    """[K, H] -> [1, K*HP] f32 (padded lanes 0, so they stay 0 through ReLU)."""
    K, H = bias.shape
    bp = jnp.zeros((K, HP), jnp.float32).at[:, :H].set(bias)
    return bp.reshape(1, K * HP)


def pack_graph_arma(params, a_norm, hidden_dim, output_dim):
    """Pad/cast/pack everything static ONCE (not per forward call)."""
    arma = params["arma"]
    num_chain = len(arma)
    K = arma[0][0].shape[0]
    input_dim = arma[0][0].shape[1]

    N = a_norm.shape[0]
    Np = _round_up(N, SUBLANE_BF16)       # bf16 sublane packing (16, not 8)
    F0p = _round_up(input_dim, LANE)
    HP = _round_up(hidden_dim, LANE)
    FOUTP = _round_up(output_dim, LANE)

    # Padded graph (padded rows/cols of A are zero, so padded h rows — which
    # become ReLU(bias) != 0 after layer 1 — never leak into valid rows).
    a_p = (jnp.zeros((Np, Np), jnp.float32).at[:N, :N].set(a_norm)
           .astype(jnp.bfloat16))

    layer_ops = []
    for l, (w_init, w_root, bias) in enumerate(arma):
        d_in = w_init.shape[1]
        d_in_p = _round_up(d_in, LANE)
        scale = 1.0 if l == 0 else 1.0 / K          # fold prev layer's mean
        layer_ops.append(_pack_stacked_weights(w_init, w_root, d_in_p, HP, scale))
        layer_ops.append(_pack_stack_bias(bias, HP))

    # fc absorbs the LAST layer's 1/K mean scale; bias is untouched.
    fc_w_p = (jnp.zeros((HP, FOUTP), jnp.float32)
              .at[:hidden_dim, :output_dim].set(params["fc_w"] / K)
              .astype(jnp.bfloat16))
    fc_b_p = (jnp.zeros((1, FOUTP), jnp.float32)
              .at[0, :output_dim].set(params["fc_b"]))

    return {
        "a_p": a_p,
        "layer_ops": tuple(layer_ops),
        "fc_w_p": fc_w_p,
        "fc_b_p": fc_b_p,
        "meta": dict(num_chain=num_chain, K=K, N=N, Np=Np, F0p=F0p, HP=HP,
                     FOUTP=FOUTP, output_dim=output_dim),
    }


# ---------------------------------------------------------------------------
# Forward: pad x and launch the single fused pallas_call (no grid pipelining)
# ---------------------------------------------------------------------------

def graph_arma_conv_forward(packed, x):
    m = packed["meta"]
    N, f_in = x.shape
    x_p = (jnp.zeros((m["Np"], m["F0p"]), jnp.float32).at[:N, :f_in].set(x)
           .astype(jnp.bfloat16))

    operands = [packed["a_p"], x_p, *packed["layer_ops"],
                packed["fc_w_p"], packed["fc_b_p"]]

    # No grid: single kernel invocation, whole arrays resident in VMEM, no
    # useless double-buffering of A / packed weights.
    vmem_specs = [pl.BlockSpec(memory_space=pltpu.MemorySpace.VMEM)
                  for _ in operands]
    kernel = _make_fused_kernel(m["num_chain"], m["K"], m["HP"])

    out_p = pl.pallas_call(
        kernel,
        out_shape=jax.ShapeDtypeStruct((m["Np"], m["FOUTP"]), jnp.float32),
        in_specs=vmem_specs,
        out_specs=pl.BlockSpec(memory_space=pltpu.MemorySpace.VMEM),
    )(*operands)

    return out_p[:N, :m["output_dim"]]


# ---------------------------------------------------------------------------
# Glue: normalized adjacency, parameters, pure-JAX reference
# ---------------------------------------------------------------------------

def build_norm_adj(edge_index, num_nodes):
    """Dense D^{-1/2} A D^{-1/2} matching gcn_norm(add_self_loops=False).
    A_norm[target, source] = deg^{-1/2}[target] * deg^{-1/2}[source]."""
    row, col = edge_index[0], edge_index[1]          # source, target
    adj = jnp.zeros((num_nodes, num_nodes), jnp.float32).at[col, row].add(1.0)
    deg = adj.sum(axis=1)
    dis = jnp.where(deg > 0, 1.0 / jnp.sqrt(deg), 0.0)
    return adj * dis[:, None] * dis[None, :]


def init_params(key, input_dim, hidden_dim, output_dim, num_stacks, num_layers):
    """num_layers == K (ARMA parallel stacks per conv), num_stacks == depth."""
    K = num_layers
    params = {"arma": [], "fc_w": None, "fc_b": None}
    dims_in = [input_dim] + [hidden_dim] * (num_stacks - 1)
    for d_in in dims_in:
        key, k1, k2, k3 = jax.random.split(key, 4)
        scale = 1.0 / jnp.sqrt(jnp.float32(d_in))
        w_init = jax.random.normal(k1, (K, d_in, hidden_dim), jnp.float32) * scale
        w_root = jax.random.normal(k2, (K, d_in, hidden_dim), jnp.float32) * scale
        bias = jax.random.normal(k3, (K, hidden_dim), jnp.float32) * 0.01
        params["arma"].append((w_init, w_root, bias))
    key, k1, k2 = jax.random.split(key, 3)
    params["fc_w"] = jax.random.normal(
        k1, (hidden_dim, output_dim), jnp.float32) / jnp.sqrt(jnp.float32(hidden_dim))
    params["fc_b"] = jax.random.normal(k2, (output_dim,), jnp.float32) * 0.01
    return params


def graph_arma_ref(params, x, a_norm):
    """f32 reference of the original module's forward."""
    h = x
    for (w_init, w_root, bias) in params["arma"]:
        K = w_init.shape[0]
        p = a_norm @ h
        ys = [jnp.maximum(p @ w_init[k] + h @ w_root[k] + bias[k], 0.0)
              for k in range(K)]
        h = sum(ys) / K
    return h @ params["fc_w"] + params["fc_b"]


# ---------------------------------------------------------------------------
# Main
# ---------------------------------------------------------------------------

if __name__ == "__main__":
    key = jax.random.PRNGKey(0)

    # Small, module-consistent shapes.
    N = 16            # nodes
    input_dim = 8
    hidden_dim = 32
    output_dim = 4
    num_stacks = 2    # depth of GraphARMAConv (number of ARMAConv layers)
    num_layers = 3    # K parallel ARMA stacks inside each ARMAConv

    key, kx = jax.random.split(key)
    x = jax.random.normal(kx, (N, input_dim), jnp.float32)

    # Symmetric ring graph: edges (i -> i+1) and (i+1 -> i), E = 2N.
    src = jnp.arange(N, dtype=jnp.int32)
    dst = (src + 1) % N
    edge_index = jnp.stack(
        [jnp.concatenate([src, dst]), jnp.concatenate([dst, src])], axis=0)

    a_norm = build_norm_adj(edge_index, N)
    params = init_params(key, input_dim, hidden_dim, output_dim,
                         num_stacks, num_layers)

    # One-time packing (static graph + params), then the cheap forward.
    packed = pack_graph_arma(params, a_norm, hidden_dim, output_dim)
    out = graph_arma_conv_forward(packed, x)
    out = jax.block_until_ready(out)

    assert out.shape == (N, output_dim)
    assert jnp.all(jnp.isfinite(out))

    # Loose parity check vs. the f32 reference (bf16 matmul inputs compound
    # rounding across the layer chain; expected abs error ~1e-2).
    ref = graph_arma_ref(params, x, a_norm)
    max_err = float(jnp.max(jnp.abs(out - ref)))
    assert max_err < 0.15, f"max abs error {max_err} too large"

    print("KERNEL_OK")
</pallas_src>

<mosaic_0001>
module attributes {stable_mosaic.version = 11 : i64} {
  func.func @kernel(%arg0: memref<16x16xbf16, #tpu.memory_space<vmem>>, %arg1: memref<16x128xbf16, #tpu.memory_space<vmem>>, %arg2: memref<256x384xbf16, #tpu.memory_space<vmem>>, %arg3: memref<1x384xf32, #tpu.memory_space<vmem>>, %arg4: memref<256x384xbf16, #tpu.memory_space<vmem>>, %arg5: memref<1x384xf32, #tpu.memory_space<vmem>>, %arg6: memref<128x128xbf16, #tpu.memory_space<vmem>>, %arg7: memref<1x128xf32, #tpu.memory_space<vmem>>, %arg8: memref<16x128xf32, #tpu.memory_space<vmem>>) attributes {dimension_semantics = [], scalar_prefetch = 0 : i64, scratch_operands = 0 : i64, tpu.core_type = #tpu.core_type<tc>} {
    %c0 = arith.constant 0 : index
    %c0_0 = arith.constant 0 : index
    %0 = vector.load %arg0[%c0, %c0_0] : memref<16x16xbf16, #tpu.memory_space<vmem>>, vector<16x16xbf16>
    %c0_1 = arith.constant 0 : index
    %c0_2 = arith.constant 0 : index
    %1 = vector.load %arg1[%c0_1, %c0_2] : memref<16x128xbf16, #tpu.memory_space<vmem>>, vector<16x128xbf16>
    %c0_3 = arith.constant 0 : index
    %c0_4 = arith.constant 0 : index
    %2 = vector.load %arg2[%c0_3, %c0_4] : memref<256x384xbf16, #tpu.memory_space<vmem>>, vector<256x384xbf16>
    %c0_5 = arith.constant 0 : index
    %c0_6 = arith.constant 0 : index
    %3 = vector.load %arg3[%c0_5, %c0_6] : memref<1x384xf32, #tpu.memory_space<vmem>>, vector<1x384xf32>
    %cst = arith.constant dense<0.000000e+00> : vector<16x128xf32>
    %4 = tpu.matmul %0, %1, %cst {dimension_numbers = #tpu.dot_dimension_numbers<[1], [0], [0], [1], [0, 0, 1, 1], [], []>} : vector<16x16xbf16>, vector<16x128xbf16>, vector<16x128xf32> -> vector<16x128xf32>
    %5 = arith.truncf %4 : vector<16x128xf32> to vector<16x128xbf16>
    %6 = tpu.concatenate %5, %1 in 1 : vector<16x128xbf16>, vector<16x128xbf16> -> vector<16x256xbf16>
    %cst_7 = arith.constant dense<0.000000e+00> : vector<16x384xf32>
    %7 = tpu.matmul %6, %2, %cst_7 {dimension_numbers = #tpu.dot_dimension_numbers<[1], [0], [0], [1], [0, 0, 1, 1], [], []>} : vector<16x256xbf16>, vector<256x384xbf16>, vector<16x384xf32> -> vector<16x384xf32>
    %8 = vector.broadcast %3 : vector<1x384xf32> to vector<16x384xf32>
    %9 = arith.addf %7, %8 : vector<16x384xf32>
    %cst_8 = arith.constant 0.000000e+00 : f32
    %10 = vector.broadcast %cst_8 : f32 to vector<16x384xf32>
    %11 = arith.maximumf %9, %10 : vector<16x384xf32>
    %12 = vector.extract_strided_slice %11 {offsets = [0, 0], sizes = [16, 128], strides = [1, 1]} : vector<16x384xf32> to vector<16x128xf32>
    %13 = vector.extract_strided_slice %11 {offsets = [0, 128], sizes = [16, 128], strides = [1, 1]} : vector<16x384xf32> to vector<16x128xf32>
    %14 = arith.addf %12, %13 : vector<16x128xf32>
    %15 = vector.extract_strided_slice %11 {offsets = [0, 256], sizes = [16, 128], strides = [1, 1]} : vector<16x384xf32> to vector<16x128xf32>
    %16 = arith.addf %14, %15 : vector<16x128xf32>
    %17 = arith.truncf %16 : vector<16x128xf32> to vector<16x128xbf16>
    %c0_9 = arith.constant 0 : index
    %c0_10 = arith.constant 0 : index
    %18 = vector.load %arg4[%c0_9, %c0_10] : memref<256x384xbf16, #tpu.memory_space<vmem>>, vector<256x384xbf16>
    %c0_11 = arith.constant 0 : index
    %c0_12 = arith.constant 0 : index
    %19 = vector.load %arg5[%c0_11, %c0_12] : memref<1x384xf32, #tpu.memory_space<vmem>>, vector<1x384xf32>
    %cst_13 = arith.constant dense<0.000000e+00> : vector<16x128xf32>
    %20 = tpu.matmul %0, %17, %cst_13 {dimension_numbers = #tpu.dot_dimension_numbers<[1], [0], [0], [1], [0, 0, 1, 1], [], []>} : vector<16x16xbf16>, vector<16x128xbf16>, vector<16x128xf32> -> vector<16x128xf32>
    %21 = arith.truncf %20 : vector<16x128xf32> to vector<16x128xbf16>
    %22 = tpu.concatenate %21, %17 in 1 : vector<16x128xbf16>, vector<16x128xbf16> -> vector<16x256xbf16>
    %cst_14 = arith.constant dense<0.000000e+00> : vector<16x384xf32>
    %23 = tpu.matmul %22, %18, %cst_14 {dimension_numbers = #tpu.dot_dimension_numbers<[1], [0], [0], [1], [0, 0, 1, 1], [], []>} : vector<16x256xbf16>, vector<256x384xbf16>, vector<16x384xf32> -> vector<16x384xf32>
    %24 = vector.broadcast %19 : vector<1x384xf32> to vector<16x384xf32>
    %25 = arith.addf %23, %24 : vector<16x384xf32>
    %cst_15 = arith.constant 0.000000e+00 : f32
    %26 = vector.broadcast %cst_15 : f32 to vector<16x384xf32>
    %27 = arith.maximumf %25, %26 : vector<16x384xf32>
    %28 = vector.extract_strided_slice %27 {offsets = [0, 0], sizes = [16, 128], strides = [1, 1]} : vector<16x384xf32> to vector<16x128xf32>
    %29 = vector.extract_strided_slice %27 {offsets = [0, 128], sizes = [16, 128], strides = [1, 1]} : vector<16x384xf32> to vector<16x128xf32>
    %30 = arith.addf %28, %29 : vector<16x128xf32>
    %31 = vector.extract_strided_slice %27 {offsets = [0, 256], sizes = [16, 128], strides = [1, 1]} : vector<16x384xf32> to vector<16x128xf32>
    %32 = arith.addf %30, %31 : vector<16x128xf32>
    %33 = arith.truncf %32 : vector<16x128xf32> to vector<16x128xbf16>
    %c0_16 = arith.constant 0 : index
    %c0_17 = arith.constant 0 : index
    %34 = vector.load %arg6[%c0_16, %c0_17] : memref<128x128xbf16, #tpu.memory_space<vmem>>, vector<128x128xbf16>
    %cst_18 = arith.constant dense<0.000000e+00> : vector<16x128xf32>
    %35 = tpu.matmul %33, %34, %cst_18 {dimension_numbers = #tpu.dot_dimension_numbers<[1], [0], [0], [1], [0, 0, 1, 1], [], []>} : vector<16x128xbf16>, vector<128x128xbf16>, vector<16x128xf32> -> vector<16x128xf32>
    %c0_19 = arith.constant 0 : index
    %c0_20 = arith.constant 0 : index
    %36 = vector.load %arg7[%c0_19, %c0_20] : memref<1x128xf32, #tpu.memory_space<vmem>>, vector<1x128xf32>
    %37 = vector.broadcast %36 : vector<1x128xf32> to vector<16x128xf32>
    %38 = arith.addf %35, %37 : vector<16x128xf32>
    %c0_21 = arith.constant 0 : index
    %c0_22 = arith.constant 0 : index
    %39 = vector.load %arg8[%c0_21, %c0_22] : memref<16x128xf32, #tpu.memory_space<vmem>>, vector<16x128xf32>
    tpu.vector_store %arg8[%c0_21, %c0_22], %38 {strides = array<i32>} : memref<16x128xf32, #tpu.memory_space<vmem>>, vector<16x128xf32>,
    return
  }
}

</mosaic_0001>

<bundles_post_ra>
// kernel: tpu_custom_call.1
= control target key start
LH: loop header
LB: loop body
LE: loop exit
PB: predicated region body
PF: predicated region fallthrough
CT: control target
= control target key end

     0   :  { %13 = vsyncpa [#allocation3], 0  ;;  %s1883_s0 = inlined_call_operand.hbm [shape: bf16[16,16], index: 0, kind: input, shape index: {}]   ;;  %s1884_s1 = inlined_call_operand.hbm [shape: bf16[16,128], index: 1, kind: input, shape index: {}]   ;;  %s1885_s2 = inlined_call_operand.hbm [shape: bf16[256,384], index: 2, kind: input, shape index: {}]   ;;  %s1886_s3 = inlined_call_operand.vmem [shape: f32[1,384], index: 3, kind: input, shape index: {}]   ;;  %s1887_s4 = inlined_call_operand.hbm [shape: bf16[256,384], index: 4, kind: input, shape index: {}]   ;;  %s1888_s5 = inlined_call_operand.vmem [shape: f32[1,384], index: 5, kind: input, shape index: {}]   ;;  %s1889_s6 = inlined_call_operand.hbm [shape: bf16[128,128], index: 6, kind: input, shape index: {}]   ;;  %s1890_s7 = inlined_call_operand.vmem [shape: f32[1,128], index: 7, kind: input, shape index: {}]   ;;  %s1891_s8 = inlined_call_operand.hbm [shape: f32[16,128], index: 8, kind: output, shape index: {}]  }
   0x1   :  { %14 = vsyncpa [#allocation6], 0 }
   0x2   :  { %15 = vsyncpa [#allocation9], 0 }
   0x3   :  { %16 = vsyncpa [#allocation4], 0  ;;  %s1689_s27 = smov [#allocation5]   ;;  %s1549_s9 = scalar_lea.hbm %s1884_s1, 128 }
   0x4   :  { %s34_s28 = sshll.u32 %s1689_s27, 4  ;;  %p1550_p0 = scmp.ne.s32.totalorder %s1884_s1, %s1549_s9  ;;  %s35_s28 = int_to_ptr.vmem [resolvable:$true] %s34_s28 }
   0x5   :  { %p1553_p1 = scmp.lt.u32.totalorder %s1549_s9, %s1884_s1 }
   0x7   :  { %p1555_p2 = pnand %p1553_p1, %p1550_p0 }
   0x9   :  { %1558 = shalt.err (!%p1555_p2)
}
   0xa   :  { %s1559_s14 = scalar_lea.vmem %s35_s28, 128  ;;  %p1564_p4 = scmp.lt.s32.totalorder %s35_s28, %s35_s28 }
   0xb   :  { %p1560_p3 = scmp.ne.s32.totalorder %s35_s28, %s1559_s14  ;;  %p1565_p5 = scmp.lt.s32.totalorder %s1559_s14, %s1559_s14 }
   0xd   :  { %p1566_p6 = por %p1565_p5, %p1564_p4 }
   0xf   :  { %p1567_p7 = pnand %p1566_p6, %p1560_p3 }
  0x11   :  { %1570 = shalt.err (!%p1567_p7)
}
  0x12   :  { %s1690_s15 = smov 64   ;;  %s1691_s16 = smov 4  }
  0x13   :  { %40 = dma.hbm_to_vmem [thread:$0]  %s1884_s1, 128, %s35_s28, [#allocation6], %s1690_s15, %s1690_s15, %s1691_s16  }
  0x14   :  { %s1692_s19 = smov [#allocation8]   ;;  %s1693_s21 = smov [#allocation2]  }
  0x15   :  { %s60_s20 = sshll.u32 %s1692_s19, 4  ;;  %s22_s22 = sshll.u32 %s1693_s21, 4  ;;  %s61_s20 = int_to_ptr.vmem [resolvable:$true] %s60_s20  ;;  %s23_s22 = int_to_ptr.vmem [resolvable:$true] %s22_s22 }
  0x16   :  { %s1571_s25 = scalar_lea.hbm %s1887_s4, 6144 }
  0x17   :  { %p1572_p8 = scmp.ne.s32.totalorder %s1887_s4, %s1571_s25  ;;  %p1575_p9 = scmp.lt.u32.totalorder %s1571_s25, %s1887_s4 }
  0x19   :  { %p1577_p10 = pnand %p1575_p9, %p1572_p8 }
  0x1b   :  { %1580 = shalt.err (!%p1577_p10)
}
  0x1c   :  { %s1581_s1 = scalar_lea.vmem %s61_s20, 6144  ;;  %p1586_p12 = scmp.lt.s32.totalorder %s61_s20, %s61_s20 }
  0x1d   :  { %p1582_p11 = scmp.ne.s32.totalorder %s61_s20, %s1581_s1  ;;  %p1587_p13 = scmp.lt.s32.totalorder %s1581_s1, %s1581_s1 }
  0x1f   :  { %p1588_p0 = por %p1587_p13, %p1586_p12 }
  0x21   :  { %p1589_p1 = pnand %p1588_p0, %p1582_p11 }
  0x23   :  { %1592 = shalt.err (!%p1589_p1)
}
  0x24   :  { %s1694_s28 = smov 192   ;;  %s1695_s9 = smov 12  }
  0x25   :  { %66 = dma.hbm_to_vmem [thread:$0]  %s1887_s4, 6144, %s61_s20, [#allocation9], %s1694_s28, %s1694_s28, %s1695_s9  }
  0x26   :  { %s1593_s14 = scalar_lea.hbm %s1883_s0, 128 }
  0x27   :  { %p1594_p2 = scmp.ne.s32.totalorder %s1883_s0, %s1593_s14  ;;  %p1597_p3 = scmp.lt.u32.totalorder %s1593_s14, %s1883_s0 }
  0x29   :  { %p1599_p4 = pnand %p1597_p3, %p1594_p2 }
  0x2b   :  { %1602 = shalt.err (!%p1599_p4)
}
  0x2c   :  { %s1603_s23 = scalar_lea.vmem %s23_s22, 128  ;;  %p1608_p6 = scmp.lt.s32.totalorder %s23_s22, %s23_s22 }
  0x2d   :  { %p1604_p5 = scmp.ne.s32.totalorder %s23_s22, %s1603_s23  ;;  %p1609_p7 = scmp.lt.s32.totalorder %s1603_s23, %s1603_s23 }
  0x2f   :  { %p1610_p8 = por %p1609_p7, %p1608_p6 }
  0x31   :  { %p1611_p9 = pnand %p1610_p8, %p1604_p5 }
  0x33   :  { %1614 = shalt.err (!%p1611_p9)
}
  0x34   :  { %28 = dma.hbm_to_vmem [thread:$0]  %s1883_s0, 128, %s23_s22, [#allocation3], %s1690_s15, %s1690_s15, %s1691_s16  }
  0x35   :  { %s1696_s24 = smov [#allocation7]   ;;  %s1697_s26 = smov [#allocation10]  }
  0x36   :  { %s46_s25 = sshll.u32 %s1696_s24, 4  ;;  %s74_s27 = sshll.u32 %s1697_s26, 4  ;;  %s47_s25 = int_to_ptr.vmem [resolvable:$true] %s46_s25  ;;  %s75_s27 = int_to_ptr.vmem [resolvable:$true] %s74_s27 }
  0x37   :  { %s1615_s1 = scalar_lea.hbm %s1885_s2, 6144 }
  0x38   :  { %p1616_p10 = scmp.ne.s32.totalorder %s1885_s2, %s1615_s1  ;;  %p1619_p11 = scmp.lt.u32.totalorder %s1615_s1, %s1885_s2 }
  0x3a   :  { %p1621_p12 = pnand %p1619_p11, %p1616_p10 }
  0x3c   :  { %1624 = shalt.err (!%p1621_p12)
}
  0x3d   :  { %s1625_s0 = scalar_lea.vmem %s47_s25, 6144  ;;  %p1630_p0 = scmp.lt.s32.totalorder %s47_s25, %s47_s25 }
  0x3e   :  { %p1626_p13 = scmp.ne.s32.totalorder %s47_s25, %s1625_s0  ;;  %p1631_p1 = scmp.lt.s32.totalorder %s1625_s0, %s1625_s0 }
  0x40   :  { %p1632_p2 = por %p1631_p1, %p1630_p0 }
  0x42   :  { %p1633_p3 = pnand %p1632_p2, %p1626_p13 }
  0x44   :  { %1636 = shalt.err (!%p1633_p3)
}
  0x45   :  { %52 = dma.hbm_to_vmem [thread:$0]  %s1885_s2, 6144, %s47_s25, [#allocation6], %s1694_s28, %s1694_s28, %s1695_s9  }
  0x46   :  { %s1637_s19 = scalar_lea.hbm %s1889_s6, 1024 }
  0x47   :  { %p1638_p4 = scmp.ne.s32.totalorder %s1889_s6, %s1637_s19  ;;  %p1641_p5 = scmp.lt.u32.totalorder %s1637_s19, %s1889_s6 }
  0x49   :  { %p1643_p6 = pnand %p1641_p5, %p1638_p4 }
  0x4b   :  { %1646 = shalt.err (!%p1643_p6)
}
  0x4c   :  { %s1647_s24 = scalar_lea.vmem %s75_s27, 1024  ;;  %p1652_p8 = scmp.lt.s32.totalorder %s75_s27, %s75_s27 }
  0x4d   :  { %p1648_p7 = scmp.ne.s32.totalorder %s75_s27, %s1647_s24  ;;  %p1653_p9 = scmp.lt.s32.totalorder %s1647_s24, %s1647_s24 }
  0x4f   :  { %p1654_p10 = por %p1653_p9, %p1652_p8 }
  0x51   :  { %p1655_p11 = pnand %p1654_p10, %p1648_p7 }
  0x53   :  { %1658 = shalt.err (!%p1655_p11)
}
  0x54   :  { %80 = dma.hbm_to_vmem [thread:$0]  %s1889_s6, 1024, %s75_s27, [#allocation9], %s1690_s15, %s1690_s15, %s1691_s16  }
  0x55   :  { %1681 = dma.done.wait [#allocation3], 128  }
  0x56   :  { %1682 = vsyncadd [#allocation3], 4294967168 }
  0x57   :  { %1683 = dma.done.wait [#allocation6], 6272  }
  0x58   :  { %1684 = vsyncadd [#allocation6], 4294961024 }
  0x59   :  { %1685 = dma.done.wait [#allocation9], 7168  }
  0x5a   :  { %1686 = vsyncadd [#allocation9], 4294960128  ;;  %v1698_v0 = vmov 0.0   ;;  %vm1699_vm0 = vmmov 0   ;;  %v1411_v1 = vld [vmem:[#allocation5] sm:$0xff]   ;;  %v1826_v2 = vld [vmem:[#allocation2] sm:$0xff]  }
  0x5b   :  { %1365 = vmatprep.subr.bf16.mxu0 %v1698_v0  ;;  %1367 = vmatprep.mubr.msk.bf16.mxu0 %vm1699_vm0, %v1698_v0  ;;  %vm179_vm1 = vcmask 130048   ;;  %v1413_v3 = vld [vmem:[#allocation7 + $0x4] ss:$12 sps:$4 sm:$0xff]   ;;  %v1415_v4 = vld [vmem:[#allocation7] ss:$12 sps:$4 sm:$0xff]   ;;  %s1700_s25 = smov [#allocation11]  }
  0x5c   :  { %1366 = vmatpush3.bf16.msra.mxu0 %v1411_v1  ;;  %529 = vmatprep.mubr.bf16.mxu1 %v1411_v1  ;;  %v1416_v5 = vld [vmem:[#allocation7 + $0x1c] ss:$12 sps:$4 sm:$0xff]   ;;  %v1418_v6 = vld [vmem:[#allocation7 + $0x18] ss:$12 sps:$4 sm:$0xff]   ;;  %v1419_v7 = vld [vmem:[#allocation7 + $0x34] ss:$12 sps:$4 sm:$0xff]  }
  0x5d   :  { %497 = vmatprep.subr.bf16.mxu1 %v1413_v3  ;;  %v1421_v8 = vld [vmem:[#allocation7 + $0x30] ss:$12 sps:$4 sm:$0xff]   ;;  %v1422_v9 = vld [vmem:[#allocation7 + $0x4c] ss:$12 sps:$4 sm:$0xff]   ;;  %v1424_v10 = vld [vmem:[#allocation7 + $0x48] ss:$12 sps:$4 sm:$0xff]  }
  0x5e   :  { %498 = vmatpush1.bf16.msra.mxu1 %v1415_v4  ;;  %v1425_v11 = vld [vmem:[#allocation7 + $0x64] ss:$12 sps:$4 sm:$0xff]   ;;  %v1439_v12 = vld [vmem:[#allocation7 + $0xc8] ss:$12 sps:$4 sm:$0xff]   ;;  %v1427_v14 = vld [vmem:[#allocation7 + $0x60] ss:$12 sps:$4 sm:$0xff]  }
  0x5f   :  { %1368 = vmatmul.mubr.msk.bf16.vlgmr.msra.gmra.mrb[0].mxu0 %vm179_vm1, %v1826_v2  ;;  %499 = vmatprep.subr.bf16.mxu1 %v1416_v5  ;;  %v1441_v13 = vld [vmem:[#allocation7 + $0x8] ss:$12 sps:$4 sm:$0xff]   ;;  %v1444_v15 = vld [vmem:[#allocation7 + $0xe0] ss:$12 sps:$4 sm:$0xff]   ;;  %v1430_v18 = vld [vmem:[#allocation7 + $0x78] ss:$12 sps:$4 sm:$0xff]  }
  0x60   :  { %572 = vmatprep.mubr.bf16.mxu0 %v1411_v1  ;;  %1310 = vmatprep.subr.bf16.mxu0 %v1439_v12  ;;  %v1428_v16 = vld [vmem:[#allocation7 + $0x7c] ss:$12 sps:$4 sm:$0xff]   ;;  %v1446_v17 = vld [vmem:[#allocation7 + $0x20] ss:$12 sps:$4 sm:$0xff]   ;;  %v1449_v20 = vld [vmem:[#allocation7 + $0xf8] ss:$12 sps:$4 sm:$0xff]  }
  0x61   :  { %1311 = vmatpush3.bf16.msra.mxu0 %v1441_v13  ;;  %v1431_v19 = vld [vmem:[#allocation7 + $0x94] ss:$12 sps:$4 sm:$0xff]   ;;  %v1451_v21 = vld [vmem:[#allocation7 + $0x38] ss:$12 sps:$4 sm:$0xff]   ;;  %v1433_v22 = vld [vmem:[#allocation7 + $0x90] ss:$12 sps:$4 sm:$0xff]  }
  0x62   :  { %500 = vmatpush1.bf16.msra.mxu1 %v1418_v6  ;;  %1312 = vmatprep.subr.bf16.mxu0 %v1444_v15  ;;  %v1454_v23 = vld [vmem:[#allocation7 + $0x110] ss:$12 sps:$4 sm:$0xff]   ;;  %v1434_v25 = vld [vmem:[#allocation7 + $0xac] ss:$12 sps:$4 sm:$0xff]   ;;  %v1459_v26 = vld [vmem:[#allocation7 + $0x128] ss:$12 sps:$4 sm:$0xff]  }
  0x63   :  { %501 = vmatprep.subr.bf16.mxu1 %v1419_v7  ;;  %v1456_v24 = vld [vmem:[#allocation7 + $0x50] ss:$12 sps:$4 sm:$0xff]   ;;  %v1436_v27 = vld [vmem:[#allocation7 + $0xa8] ss:$12 sps:$4 sm:$0xff]   ;;  %v1464_v30 = vld [vmem:[#allocation7 + $0x140] ss:$12 sps:$4 sm:$0xff]  }
  0x64   :  { %v1461_v28 = vld [vmem:[#allocation7 + $0x68] ss:$12 sps:$4 sm:$0xff]   ;;  %v1437_v29 = vld [vmem:[#allocation7 + $0xc4] ss:$12 sps:$4 sm:$0xff]   ;;  %v1440_v31 = vld [vmem:[#allocation7 + $0xc0] ss:$12 sps:$4 sm:$0xff]  }
  0x65   :  { %1313 = vmatpush3.bf16.msra.mxu0 %v1446_v17  ;;  %v1466_v32 = vld [vmem:[#allocation7 + $0x80] ss:$12 sps:$4 sm:$0xff]   ;;  %v1442_v33 = vld [vmem:[#allocation7 + $0xdc] ss:$12 sps:$4 sm:$0xff]   ;;  %v1469_v34 = vld [vmem:[#allocation7 + $0x158] ss:$12 sps:$4 sm:$0xff]  }
  0x66   :  { %502 = vmatpush1.bf16.msra.mxu1 %v1421_v8  ;;  %1314 = vmatprep.subr.bf16.mxu0 %v1449_v20  ;;  %v1445_v35 = vld [vmem:[#allocation7 + $0xd8] ss:$12 sps:$4 sm:$0xff]   ;;  %v1447_v37 = vld [vmem:[#allocation7 + $0xf4] ss:$12 sps:$4 sm:$0xff]   ;;  %v1450_v38 = vld [vmem:[#allocation7 + $0xf0] ss:$12 sps:$4 sm:$0xff]   ;;  %v226_v8 = vlaneseq }
  0x67   :  { %503 = vmatprep.subr.bf16.mxu1 %v1422_v9  ;;  %v1471_v36 = vld [vmem:[#allocation7 + $0x98] ss:$12 sps:$4 sm:$0xff]   ;;  %v1455_v40 = vld [vmem:[#allocation7 + $0x108] ss:$12 sps:$4 sm:$0xff]   ;;  %v1460_v42 = vld [vmem:[#allocation7 + $0x120] ss:$12 sps:$4 sm:$0xff]  }
  0x68   :  { %v1452_v39 = vld [vmem:[#allocation7 + $0x10c] ss:$12 sps:$4 sm:$0xff]   ;;  %v1457_v41 = vld [vmem:[#allocation7 + $0x124] ss:$12 sps:$4 sm:$0xff]   ;;  %v1462_v43 = vld [vmem:[#allocation7 + $0x13c] ss:$12 sps:$4 sm:$0xff]  }
  0x69   :  { %1315 = vmatpush3.bf16.msra.mxu0 %v1451_v21  ;;  %v1465_v44 = vld [vmem:[#allocation7 + $0x138] ss:$12 sps:$4 sm:$0xff]   ;;  %v1467_v45 = vld [vmem:[#allocation7 + $0x154] ss:$12 sps:$4 sm:$0xff]   ;;  %v1470_v46 = vld [vmem:[#allocation7 + $0x150] ss:$12 sps:$4 sm:$0xff]  }
  0x6a   :  { %504 = vmatpush1.bf16.msra.mxu1 %v1424_v10  ;;  %1316 = vmatprep.subr.bf16.mxu0 %v1454_v23  ;;  %v1472_v47 = vld [vmem:[#allocation7 + $0x16c] ss:$12 sps:$4 sm:$0xff]   ;;  %v1474_v48 = vld [vmem:[#allocation7 + $0x170] ss:$12 sps:$4 sm:$0xff]   ;;  %v1475_v49 = vld [vmem:[#allocation7 + $0x168] ss:$12 sps:$4 sm:$0xff]  }
  0x6b   :  { %505 = vmatprep.subr.bf16.mxu1 %v1425_v11  ;;  %v1476_v50 = vld [vmem:[#allocation7 + $0xb0] ss:$12 sps:$4 sm:$0xff]   ;;  %v1504_v56 = vld [vmem:[#allocation8 + $0xc8] ss:$12 sps:$4 sm:$0xff]   ;;  %v1509_v58 = vld [vmem:[#allocation8 + $0xe0] ss:$12 sps:$4 sm:$0xff]  }
  0x6c   :  { %v1505_v57 = vld [vmem:[#allocation8 + $0x8] ss:$12 sps:$4 sm:$0xff]   ;;  %v1510_v59 = vld [vmem:[#allocation8 + $0x20] ss:$12 sps:$4 sm:$0xff]   ;;  %v1514_v60 = vld [vmem:[#allocation8 + $0xf8] ss:$12 sps:$4 sm:$0xff]  }
  0x6d   :  { %1317 = vmatpush3.bf16.msra.mxu0 %v1456_v24  ;;  %v1515_v61 = vld [vmem:[#allocation8 + $0x38] ss:$12 sps:$4 sm:$0xff]   ;;  %v1519_v62 = vld [vmem:[#allocation8 + $0x110] ss:$12 sps:$4 sm:$0xff]   ;;  %v1524_v1 = vld [vmem:[#allocation8 + $0x128] ss:$12 sps:$4 sm:$0xff]  }
  0x6e   :  { %506 = vmatpush1.bf16.msra.mxu1 %v1427_v14  ;;  %1318 = vmatprep.subr.bf16.mxu0 %v1459_v26  ;;  %v1520_v63 = vld [vmem:[#allocation8 + $0x50] ss:$12 sps:$4 sm:$0xff]   ;;  %v1525_v3 = vld [vmem:[#allocation8 + $0x68] ss:$12 sps:$4 sm:$0xff]   ;;  %v1529_v4 = vld [vmem:[#allocation8 + $0x140] ss:$12 sps:$4 sm:$0xff]  }
  0x6f   :  { %507 = vmatprep.subr.bf16.mxu1 %v1428_v16  ;;  %v1530_v5 = vld [vmem:[#allocation8 + $0x80] ss:$12 sps:$4 sm:$0xff]   ;;  %v1534_v6 = vld [vmem:[#allocation8 + $0x158] ss:$12 sps:$4 sm:$0xff]   ;;  %v1833_v9 = vshrl.u32 %v226_v8, 7  ;;  %s1185_s26 = sshll.u32 %s1700_s25, 4  ;;  %s1186_s26 = int_to_ptr.vmem [resolvable:$true] %s1185_s26 }
  0x70   :  { %v1535_v7 = vld [vmem:[#allocation8 + $0x98] ss:$12 sps:$4 sm:$0xff]   ;;  %v167_v11 = vld [vmem:[%s1886_s3] sm:$0x7]  ;;  %s1659_s27 = scalar_lea.vmem %s1186_s26, 256  ;;  %p1664_p13 = scmp.lt.s32.totalorder %s1186_s26, %s1186_s26 }
  0x71   :  { %1319 = vmatpush3.bf16.msra.mxu0 %v1461_v28  ;;  %v228_v10 = vsub.s32 0, %v1833_v9  ;;  %v232_v12 = vsub.s32 1, %v1833_v9  ;;  %v236_v13 = vsub.s32 2, %v1833_v9  ;;  %v1526_v8 = vld [vmem:[#allocation8 + $0x138] ss:$12 sps:$4 sm:$0xff]   ;;  %p1660_p12 = scmp.ne.s32.totalorder %s1186_s26, %s1659_s27  ;;  %p1665_p0 = scmp.lt.s32.totalorder %s1659_s27, %s1659_s27 }
  0x72   :  { %508 = vmatpush1.bf16.msra.mxu1 %v1430_v18  ;;  %1320 = vmatprep.subr.bf16.mxu0 %v1464_v30 }
  0x73   :  { %509 = vmatprep.subr.bf16.mxu1 %v1431_v19  ;;  %v229_v14 = vrot.slane %v167_v11, %v228_v10  ;;  %v233_v15 = vrot.slane %v167_v11, %v232_v12  ;;  %v237_v18 = vrot.slane %v167_v11, %v236_v13  ;;  %v1533_v11 = vld [vmem:[#allocation8 + $0x154] ss:$12 sps:$4 sm:$0xff]   ;;  %p1666_p1 = por %p1665_p0, %p1664_p13 }
  0x75   :  { %1321 = vmatpush3.bf16.msra.mxu0 %v1466_v32  ;;  %p1667_p2 = pnand %p1666_p1, %p1660_p12 }
  0x76   :  { %510 = vmatpush1.bf16.msra.mxu1 %v1433_v22  ;;  %1322 = vmatprep.subr.bf16.mxu0 %v1469_v34 }
  0x77   :  { %511 = vmatprep.subr.bf16.mxu1 %v1434_v25 }
  0x79   :  { %1323 = vmatpush3.bf16.msra.mxu0 %v1471_v36 }
  0x7a   :  { %512 = vmatpush1.bf16.msra.mxu1 %v1436_v27  ;;  %1324 = vmatprep.subr.bf16.mxu0 %v1474_v48  ;;  %v1485_v48 = vld [vmem:[#allocation8 + $0x34] ss:$12 sps:$4 sm:$0xff]  }
  0x7b   :  { %513 = vmatprep.subr.bf16.mxu1 %v1437_v29 }
  0x7d   :  { %1325 = vmatpush3.bf16.msra.mxu0 %v1476_v50  ;;  %v1488_v50 = vld [vmem:[#allocation8 + $0x4c] ss:$12 sps:$4 sm:$0xff]  }
  0x7e   :  { %514 = vmatpush1.bf16.msra.mxu1 %v1440_v31  ;;  %1371 = vmatprep.subr.bf16.mxu0 %v1698_v0 }
  0x7f   :  { %515 = vmatprep.subr.bf16.mxu1 %v1442_v33 }
  0x82   :  { %516 = vmatpush1.bf16.msra.mxu1 %v1445_v35 }
  0x83   :  { %517 = vmatprep.subr.bf16.mxu1 %v1447_v37 }
  0x86   :  { %518 = vmatpush1.bf16.msra.mxu1 %v1450_v38 }
  0x87   :  { %519 = vmatprep.subr.bf16.mxu1 %v1452_v39 }
  0x8a   :  { %520 = vmatpush1.bf16.msra.mxu1 %v1455_v40 }
  0x8b   :  { %521 = vmatprep.subr.bf16.mxu1 %v1457_v41 }
  0x8e   :  { %522 = vmatpush1.bf16.msra.mxu1 %v1460_v42 }
  0x8f   :  { %523 = vmatprep.subr.bf16.mxu1 %v1462_v43  ;;  %v1479_v43 = vld [vmem:[#allocation8 + $0x4] ss:$12 sps:$4 sm:$0xff]  }
  0x92   :  { %524 = vmatpush1.bf16.msra.mxu1 %v1465_v44 }
  0x93   :  { %525 = vmatprep.subr.bf16.mxu1 %v1467_v45  ;;  %v1477_v45 = vld [vmem:[#allocation8] ss:$12 sps:$4 sm:$0xff]  }
  0x96   :  { %526 = vmatpush1.bf16.msra.mxu1 %v1470_v46  ;;  %v1482_v46 = vld [vmem:[#allocation8 + $0x1c] ss:$12 sps:$4 sm:$0xff]  }
  0x97   :  { %527 = vmatprep.subr.bf16.mxu1 %v1472_v47  ;;  %v1480_v47 = vld [vmem:[#allocation8 + $0x18] ss:$12 sps:$4 sm:$0xff]  }
  0x9a   :  { %528 = vmatpush1.bf16.msra.mxu1 %v1475_v49  ;;  %v1483_v49 = vld [vmem:[#allocation8 + $0x30] ss:$12 sps:$4 sm:$0xff]  }
  0x9b   :  { %1334 = vmatprep.subr.bf16.mxu1 %v1504_v56  ;;  %v1495_v56 = vld [vmem:[#allocation8 + $0x90] ss:$12 sps:$4 sm:$0xff]  }
 0x132   :  { %v217_v51 = vpop.f32.mrb[0].mxu0 }
 0x133   :  { %v1369_v52 = vpop.f32.mrb[1].mxu0 }
 0x134   :  { %v220_v53 = vpop.f32.mrb[2].mxu0  ;;  %v1491_v52 = vld [vmem:[#allocation8 + $0x64] ss:$12 sps:$4 sm:$0xff]  }
 0x135   :  { %v224_v54 = vpack.c.bf16 %v220_v53, %v217_v51  ;;  %v1370_v55 = vpop.f32.mrb[3].mxu0  ;;  %v1486_v51 = vld [vmem:[#allocation8 + $0x48] ss:$12 sps:$4 sm:$0xff]   ;;  %v1489_v53 = vld [vmem:[#allocation8 + $0x60] ss:$12 sps:$4 sm:$0xff]  }
 0x136   :  { %v1492_v55 = vld [vmem:[#allocation8 + $0x78] ss:$12 sps:$4 sm:$0xff]  }
 0x137   :  { %530 = vmatmul.mubr.bf16.vlgmr.msra.gmra.mrb[0].mxu1 %v224_v54  ;;  %573 = vmatmul.mubr.bf16.vlgmr.msra.gmra.mrb[4].mxu0 %v224_v54  ;;  %v1494_v54 = vld [vmem:[#allocation8 + $0x7c] ss:$12 sps:$4 sm:$0xff]  }
 0x138   :  { %1373 = vmatprep.mubr.msk.bf16.mxu0 %vm1699_vm0, %v1698_v0  ;;  %1335 = vmatpush3.bf16.msra.mxu1 %v1505_v57  ;;  %v1500_v57 = vld [vmem:[#allocation8 + $0xac] ss:$12 sps:$4 sm:$0xff]  }
 0x139   :  { %1336 = vmatprep.subr.bf16.mxu1 %v1509_v58  ;;  %v1498_v58 = vld [vmem:[#allocation8 + $0xa8] ss:$12 sps:$4 sm:$0xff]  }
 0x13c   :  { %1337 = vmatpush3.bf16.msra.mxu1 %v1510_v59  ;;  %v1503_v59 = vld [vmem:[#allocation8 + $0xc4] ss:$12 sps:$4 sm:$0xff]  }
 0x13d   :  { %1338 = vmatprep.subr.bf16.mxu1 %v1514_v60  ;;  %v1501_v60 = vld [vmem:[#allocation8 + $0xc0] ss:$12 sps:$4 sm:$0xff]  }
 0x140   :  { %1339 = vmatpush3.bf16.msra.mxu1 %v1515_v61  ;;  %v1508_v61 = vld [vmem:[#allocation8 + $0xdc] ss:$12 sps:$4 sm:$0xff]  }
 0x141   :  { %1340 = vmatprep.subr.bf16.mxu1 %v1519_v62  ;;  %v1506_v62 = vld [vmem:[#allocation8 + $0xd8] ss:$12 sps:$4 sm:$0xff]  }
 0x144   :  { %1341 = vmatpush3.bf16.msra.mxu1 %v1520_v63  ;;  %v1513_v63 = vld [vmem:[#allocation8 + $0xf4] ss:$12 sps:$4 sm:$0xff]  }
 0x145   :  { %1342 = vmatprep.subr.bf16.mxu1 %v1524_v1  ;;  %v1511_v1 = vld [vmem:[#allocation8 + $0xf0] ss:$12 sps:$4 sm:$0xff]  }
 0x148   :  { %1343 = vmatpush3.bf16.msra.mxu1 %v1525_v3  ;;  %v1518_v3 = vld [vmem:[#allocation8 + $0x10c] ss:$12 sps:$4 sm:$0xff]  }
 0x149   :  { %1344 = vmatprep.subr.bf16.mxu1 %v1529_v4  ;;  %v1516_v4 = vld [vmem:[#allocation8 + $0x108] ss:$12 sps:$4 sm:$0xff]  }
 0x14c   :  { %1345 = vmatpush3.bf16.msra.mxu1 %v1530_v5  ;;  %v1523_v5 = vld [vmem:[#allocation8 + $0x124] ss:$12 sps:$4 sm:$0xff]  }
 0x14d   :  { %1346 = vmatprep.subr.bf16.mxu1 %v1534_v6  ;;  %v1521_v6 = vld [vmem:[#allocation8 + $0x120] ss:$12 sps:$4 sm:$0xff]  }
 0x150   :  { %1347 = vmatpush3.bf16.msra.mxu1 %v1535_v7  ;;  %v1528_v7 = vld [vmem:[#allocation8 + $0x13c] ss:$12 sps:$4 sm:$0xff]  }
 0x20a   :  { %v531_v16 = vpop.f32.mrb[0].mxu1  ;;  %v1326_v17 = vpop.f32.mrb[4].mxu0 }
 0x20b   :  { %v532_v19 = vadd.f32 %v531_v16, %v229_v14  ;;  %v533_v20 = vpop.f32.mrb[1].mxu1  ;;  %v1327_v21 = vpop.f32.mrb[5].mxu0  ;;  %v1539_v16 = vld [vmem:[#allocation8 + $0x170] ss:$12 sps:$4 sm:$0xff]  }
 0x20c   :  { %v534_v22 = vadd.f32 %v533_v20, %v233_v15  ;;  %v1328_v23 = vadd.f32 %v1327_v21, %v1326_v17  ;;  %v535_v24 = vpop.f32.mrb[2].mxu1  ;;  %v1329_v25 = vpop.f32.mrb[6].mxu0  ;;  %v1536_v17 = vld [vmem:[#allocation8 + $0x168] ss:$12 sps:$4 sm:$0xff]   ;;  %1348 = vmatprep.subr.bf16.mxu1 %v1539_v16 }
 0x20d   :  { %v581_v26 = vmax.f32 %v532_v19, 0.0  ;;  %v536_v27 = vadd.f32 %v535_v24, %v229_v14  ;;  %v537_v28 = vpop.f32.mrb[3].mxu1  ;;  %v1330_v29 = vpop.f32.mrb[7].mxu0  ;;  %v1531_v14 = vld [vmem:[#allocation8 + $0x150] ss:$12 sps:$4 sm:$0xff]  }
 0x20e   :  { %v582_v30 = vmax.f32 %v534_v22, 0.0  ;;  %v575_v31 = vadd.f32 %v1328_v23, %v237_v18  ;;  %v538_v32 = vadd.f32 %v537_v28, %v233_v15  ;;  %v1331_v33 = vadd.f32 %v1330_v29, %v1329_v25  ;;  %v1538_v15 = vld [vmem:[#allocation8 + $0x16c] ss:$12 sps:$4 sm:$0xff]   ;;  %v1541_v22 = vld [vmem:[#allocation10] sm:$0xff]  }
 0x20f   :  { %v584_v34 = vmax.f32 %v536_v27, 0.0  ;;  %v1542_v25 = vld [vmem:[#allocation10 + $0x8] sm:$0xff]   ;;  %v1544_v27 = vld [vmem:[#allocation10 + $0x18] sm:$0xff]   ;;  %v1545_v28 = vld [vmem:[#allocation10 + $0x20] sm:$0xff]  }
 0x210   :  { %v587_v35 = vadd.f32 %v582_v30, %v581_v26  ;;  %v583_v36 = vmax.f32 %v575_v31, 0.0  ;;  %v585_v37 = vmax.f32 %v538_v32, 0.0  ;;  %v578_v38 = vadd.f32 %v1331_v33, %v237_v18  ;;  %v1540_v18 = vld [vmem:[#allocation8 + $0xb0] ss:$12 sps:$4 sm:$0xff]   ;;  %v1546_v29 = vld [vmem:[#allocation10 + $0x28] sm:$0xff]  }
 0x211   :  { %1349 = vmatpush3.bf16.msra.mxu1 %v1540_v18  ;;  %v1543_v26 = vld [vmem:[#allocation10 + $0x10] sm:$0xff]   ;;  %v1548_v31 = vld [vmem:[#allocation10 + $0x38] sm:$0xff]  }
 0x212   :  { %v589_v39 = vadd.f32 %v587_v35, %v583_v36  ;;  %v588_v40 = vadd.f32 %v585_v37, %v584_v34  ;;  %v586_v41 = vmax.f32 %v578_v38, 0.0  ;;  %1377 = vmatprep.subr.bf16.mxu1 %v1698_v0  ;;  %v1547_v30 = vld [vmem:[#allocation10 + $0x30] sm:$0xff]  }
 0x213   :  { %v656_v32 = vld [vmem:[%s1888_s5] sm:$0x7] }
 0x214   :  { %v590_v42 = vadd.f32 %v588_v40, %v586_v41  ;;  %v703_v33 = vrot.slane %v656_v32, %v228_v10  ;;  %v707_v34 = vrot.slane %v656_v32, %v232_v12  ;;  %v711_v37 = vrot.slane %v656_v32, %v236_v13 }
 0x216   :  { %v591_v44 = vpack.c.bf16 %v590_v42, %v589_v39 }
 0x218   :  { %1372 = vmatpush3.bf16.msra.mxu0 %v591_v44  ;;  %1046 = vmatprep.mubr.bf16.mxu1 %v591_v44 }
 0x219   :  { %971 = vmatprep.subr.bf16.mxu0 %v1479_v43 }
 0x21b   :  { %1374 = vmatmul.mubr.msk.bf16.vlgmr.msra.gmra.mrb[8].mxu0 %vm179_vm1, %v1826_v2  ;;  %v1497_v2 = vld [vmem:[#allocation8 + $0x94] ss:$12 sps:$4 sm:$0xff]  }
 0x21c   :  { %1003 = vmatprep.mubr.bf16.mxu0 %v591_v44  ;;  %972 = vmatpush1.bf16.msra.mxu0 %v1477_v45 }
 0x21d   :  { %973 = vmatprep.subr.bf16.mxu0 %v1482_v46 }
 0x220   :  { %974 = vmatpush1.bf16.msra.mxu0 %v1480_v47 }
 0x221   :  { %975 = vmatprep.subr.bf16.mxu0 %v1485_v48 }
 0x224   :  { %976 = vmatpush1.bf16.msra.mxu0 %v1483_v49 }
 0x225   :  { %977 = vmatprep.subr.bf16.mxu0 %v1488_v50 }
 0x228   :  { %978 = vmatpush1.bf16.msra.mxu0 %v1486_v51 }
 0x229   :  { %979 = vmatprep.subr.bf16.mxu0 %v1491_v52 }
 0x22c   :  { %980 = vmatpush1.bf16.msra.mxu0 %v1489_v53 }
 0x22d   :  { %981 = vmatprep.subr.bf16.mxu0 %v1494_v54 }
 0x230   :  { %982 = vmatpush1.bf16.msra.mxu0 %v1492_v55 }
 0x231   :  { %983 = vmatprep.subr.bf16.mxu0 %v1497_v2 }
 0x234   :  { %984 = vmatpush1.bf16.msra.mxu0 %v1495_v56 }
 0x235   :  { %985 = vmatprep.subr.bf16.mxu0 %v1500_v57  ;;  %v1299_v57 = vld [vmem:[%s1890_s7] ss:$0 sm:$0xff] }
 0x238   :  { %986 = vmatpush1.bf16.msra.mxu0 %v1498_v58 }
 0x239   :  { %987 = vmatprep.subr.bf16.mxu0 %v1503_v59 }
 0x23c   :  { %988 = vmatpush1.bf16.msra.mxu0 %v1501_v60 }
 0x23d   :  { %989 = vmatprep.subr.bf16.mxu0 %v1508_v61 }
 0x240   :  { %990 = vmatpush1.bf16.msra.mxu0 %v1506_v62 }
 0x241   :  { %991 = vmatprep.subr.bf16.mxu0 %v1513_v63 }
 0x244   :  { %992 = vmatpush1.bf16.msra.mxu0 %v1511_v1 }
 0x245   :  { %993 = vmatprep.subr.bf16.mxu0 %v1518_v3 }
 0x248   :  { %994 = vmatpush1.bf16.msra.mxu0 %v1516_v4 }
 0x249   :  { %995 = vmatprep.subr.bf16.mxu0 %v1523_v5 }
 0x24c   :  { %996 = vmatpush1.bf16.msra.mxu0 %v1521_v6 }
 0x24d   :  { %997 = vmatprep.subr.bf16.mxu0 %v1528_v7 }
 0x250   :  { %998 = vmatpush1.bf16.msra.mxu0 %v1526_v8 }
 0x251   :  { %999 = vmatprep.subr.bf16.mxu0 %v1533_v11 }
 0x254   :  { %1000 = vmatpush1.bf16.msra.mxu0 %v1531_v14 }
 0x255   :  { %1001 = vmatprep.subr.bf16.mxu0 %v1538_v15 }
 0x258   :  { %1002 = vmatpush1.bf16.msra.mxu0 %v1536_v17 }
 0x2ee   :  { %v691_v19 = vpop.f32.mrb[8].mxu0 }
 0x2ef   :  { %v1375_v20 = vpop.f32.mrb[9].mxu0 }
 0x2f0   :  { %v694_v21 = vpop.f32.mrb[10].mxu0 }
 0x2f1   :  { %v698_v23 = vpack.c.bf16 %v694_v21, %v691_v19  ;;  %v1376_v24 = vpop.f32.mrb[11].mxu0 }
 0x2f3   :  { %1004 = vmatmul.mubr.bf16.vlgmr.msra.gmra.mrb[12].mxu0 %v698_v23  ;;  %1047 = vmatmul.mubr.bf16.vlgmr.msra.gmra.mrb[4].mxu1 %v698_v23 }
 0x2f4   :  { %1378 = vmatpush3.bf16.msra.mxu1 %v1541_v22  ;;  %1393 = vmatprep.mubr.msk.bf16.mxu1 %vm1699_vm0, %v1698_v0 }
 0x2f5   :  { %1379 = vmatprep.subr.bf16.mxu1 %v1698_v0 }
 0x2f8   :  { %1380 = vmatpush3.bf16.msra.mxu1 %v1542_v25 }
 0x2f9   :  { %1381 = vmatprep.subr.bf16.mxu1 %v1698_v0 }
 0x2fc   :  { %1382 = vmatpush3.bf16.msra.mxu1 %v1543_v26 }
 0x2fd   :  { %1383 = vmatprep.subr.bf16.mxu1 %v1698_v0 }
 0x300   :  { %1384 = vmatpush3.bf16.msra.mxu1 %v1544_v27 }
 0x301   :  { %1385 = vmatprep.subr.bf16.mxu1 %v1698_v0 }
 0x304   :  { %1386 = vmatpush3.bf16.msra.mxu1 %v1545_v28 }
 0x305   :  { %1387 = vmatprep.subr.bf16.mxu1 %v1698_v0 }
 0x308   :  { %1388 = vmatpush3.bf16.msra.mxu1 %v1546_v29 }
 0x309   :  { %1389 = vmatprep.subr.bf16.mxu1 %v1698_v0 }
 0x30c   :  { %1390 = vmatpush3.bf16.msra.mxu1 %v1547_v30 }
 0x30d   :  { %1391 = vmatprep.subr.bf16.mxu1 %v1698_v0 }
 0x310   :  { %1392 = vmatpush3.bf16.msra.mxu1 %v1548_v31 }
 0x3c6   :  { %v1005_v35 = vpop.f32.mrb[12].mxu0  ;;  %v1350_v36 = vpop.f32.mrb[4].mxu1 }
 0x3c7   :  { %v1006_v38 = vadd.f32 %v1005_v35, %v703_v33  ;;  %v1007_v39 = vpop.f32.mrb[13].mxu0  ;;  %v1351_v0 = vpop.f32.mrb[5].mxu1 }
 0x3c8   :  { %v1008_v40 = vadd.f32 %v1007_v39, %v707_v34  ;;  %v1352_v41 = vadd.f32 %v1351_v0, %v1350_v36  ;;  %v1009_v42 = vpop.f32.mrb[14].mxu0  ;;  %v1353_v43 = vpop.f32.mrb[6].mxu1 }
 0x3c9   :  { %v1055_v44 = vmax.f32 %v1006_v38, 0.0  ;;  %v1010_v45 = vadd.f32 %v1009_v42, %v703_v33  ;;  %v1011_v46 = vpop.f32.mrb[15].mxu0  ;;  %v1354_v47 = vpop.f32.mrb[7].mxu1 }
 0x3ca   :  { %v1056_v10 = vmax.f32 %v1008_v40, 0.0  ;;  %v1049_v48 = vadd.f32 %v1352_v41, %v711_v37  ;;  %v1012_v49 = vadd.f32 %v1011_v46, %v707_v34  ;;  %v1355_v12 = vadd.f32 %v1354_v47, %v1353_v43 }
 0x3cb   :  { %v1058_v50 = vmax.f32 %v1010_v45, 0.0 }
 0x3cc   :  { %v1061_v51 = vadd.f32 %v1056_v10, %v1055_v44  ;;  %v1057_v52 = vmax.f32 %v1049_v48, 0.0  ;;  %v1059_v9 = vmax.f32 %v1012_v49, 0.0  ;;  %v1052_v13 = vadd.f32 %v1355_v12, %v711_v37 }
 0x3ce   :  { %v1063_v53 = vadd.f32 %v1061_v51, %v1057_v52  ;;  %v1062_v54 = vadd.f32 %v1059_v9, %v1058_v50  ;;  %v1060_v55 = vmax.f32 %v1052_v13, 0.0 }
 0x3d0   :  { %v1064_v2 = vadd.f32 %v1062_v54, %v1060_v55 }
 0x3d2   :  { %v1065_v56 = vpack.c.bf16 %v1064_v2, %v1063_v53 }
 0x3d4   :  { %1394 = vmatmul.mubr.bf16.vlgmr.msra.gmra.mrb[8].mxu1 %v1065_v56 }
 0x4a7   :  { %v1171_v58 = vpop.f32.mrb[8].mxu1 }
 0x4a8   :  { %v1172_v59 = vadd.f32 %v1299_v57, %v1171_v58  ;;  %v1395_v60 = vpop.f32.mrb[9].mxu1 }
 0x4a9   :  { %v1174_v61 = vpop.f32.mrb[10].mxu1 }
 0x4aa   :  { %1178 = vst [vmem:[#allocation11] sm:$0xff] %v1172_v59  ;;  %v1175_v62 = vadd.f32 %v1299_v57, %v1174_v61  ;;  %v1396_v63 = vpop.f32.mrb[11].mxu1 }
 0x4ac   :  { %1179 = vst [vmem:[#allocation11 + $0x8] sm:$0xff] %v1175_v62 }
 0x4ad   :  { %1670 = shalt.err (!%p1667_p2)
}
 0x4ae   :  { %s1671_s30 = scalar_lea.hbm %s1891_s8, 256 }
 0x4af   :  { %p1672_p3 = scmp.ne.s32.totalorder %s1891_s8, %s1671_s30  ;;  %p1675_p4 = scmp.lt.u32.totalorder %s1671_s30, %s1891_s8 }
 0x4b1   :  { %p1677_p5 = pnand %p1675_p4, %p1672_p3 }
 0x4b3   :  { %1680 = shalt.err (!%p1677_p5)
}
 0x4b4   :  { %s1701_s13 = smov 128   ;;  %s1702_s0 = smov 8  }
 0x4b5   :  { %1191 = dma.vmem_to_hbm [thread:$0]  %s1186_s26, 256, %s1891_s8, [#allocation4], %s1701_s13, %s1701_s13, %s1702_s0  }
 0x4b6   :  { %1687 = dma.done.wait [#allocation4], 256  }
 0x4b7   :  { %1688 = vsyncadd [#allocation4], 4294967040 }
 0x4b8   :  { %1195 = vsyncpa [#allocation3], 1 }
 0x4b9   :  { %1196 = vsyncpa [#allocation6], 1 }
 0x4ba   :  { %1197 = vsyncpa [#allocation9], 1 }
 0x4bb   :  { %1198 = vsyncpa [#allocation4], 1 }

</bundles_post_ra>
